<compile_context>
chip_gen: v7x
topology: tpu7x:2x2x1
jax: 0.10.0
libtpu: 0.0.40
codegen_flags: <defaults>
</compile_context>

<pallas_src>
import functools

import jax
import jax.numpy as jnp
from jax import lax
from jax.experimental import pallas as pl
from jax.experimental.pallas import tpu as pltpu


def _round_up(x: int, m: int) -> int:
    return (x + m - 1) // m * m


_ALIGN = 16  # row alignment inside the packed slab (valid for f32 and bf16 tiles)


# --------------------------------------------------------------------------- #
# Kernel
# --------------------------------------------------------------------------- #
def policy_net_kernel(x_ref, p_ref, out_ref, *, S, H_pad, A_pad, A,
                      off_w1, off_b1, off_w2, off_b2, off_w3, off_b3):
    f32 = jnp.float32
    x = x_ref[...]                                               # (TB, S)

    # Static, zero-cost views into the packed, VMEM-resident parameter slab.
    w1 = p_ref[pl.ds(off_w1, S),     pl.ds(0, H_pad)]            # (S, H_pad)
    b1 = p_ref[pl.ds(off_b1, 1),     pl.ds(0, H_pad)]            # (1, H_pad)
    w2 = p_ref[pl.ds(off_w2, H_pad), pl.ds(0, H_pad)]            # (H_pad, H_pad)
    b2 = p_ref[pl.ds(off_b2, 1),     pl.ds(0, H_pad)]            # (1, H_pad)
    w3 = p_ref[pl.ds(off_w3, H_pad), pl.ds(0, A_pad)]            # (H_pad, A_pad)
    b3 = p_ref[pl.ds(off_b3, 1),     pl.ds(0, A_pad)]            # (1, A_pad)

    # MXU matmuls in the (possibly bf16) parameter dtype, f32 accumulation.
    # Padded hidden columns (zero weights + zero bias) stay exactly 0 thru ReLU.
    h1 = jnp.maximum(
        jnp.dot(x, w1, preferred_element_type=f32) + b1.astype(f32), 0.0)
    h2 = jnp.maximum(
        jnp.dot(h1.astype(w2.dtype), w2, preferred_element_type=f32)
        + b2.astype(f32), 0.0)
    logits = (jnp.dot(h2.astype(w3.dtype), w3, preferred_element_type=f32)
              + b3.astype(f32))

    # Dtype-robust masking of the padded action lanes (explicit lane mask
    # instead of a -1e30 bias baked into the slab).
    col = lax.broadcasted_iota(jnp.int32, (1, A_pad), 1)
    logits = jnp.where(col < A, logits, jnp.float32(-3.0e38))

    # Numerically stable softmax over the lane-dense padded action axis.
    m = jnp.max(logits, axis=-1, keepdims=True)
    e = jnp.exp(logits - m)
    denom = jnp.sum(e, axis=-1, keepdims=True)
    probs = e / denom            # exact division: probs may feed log-prob terms

    # Compact store: only the real action columns go back to HBM.
    out_ref[...] = probs[:, :A].astype(out_ref.dtype)


# --------------------------------------------------------------------------- #
# Parameter packing (runs ONCE per parameter update, not per forward call)
# --------------------------------------------------------------------------- #
def pack_params(params, dtype):
    """Pack w1,b1,w2,b2,w3,b3 into one lane-dense (R, C) slab of `dtype`.

    Weights are stored pre-transposed as (in_features, out_features)."""
    w1, b1 = params["w1"], params["b1"]
    w2, b2 = params["w2"], params["b2"]
    w3, b3 = params["w3"], params["b3"]
    state_dim, hidden_dim = w1.shape
    action_num = w3.shape[1]

    H_pad = _round_up(hidden_dim, 128)
    A_pad = _round_up(action_num, 128)
    C = max(H_pad, A_pad)

    off_w1 = 0
    off_b1 = off_w1 + _round_up(state_dim, _ALIGN)
    off_w2 = off_b1 + _ALIGN
    off_b2 = off_w2 + H_pad
    off_w3 = off_b2 + _ALIGN
    off_b3 = off_w3 + H_pad
    R = off_b3 + _ALIGN                  # multiple of 16 by construction

    slab = jnp.zeros((R, C), jnp.float32)
    slab = slab.at[off_w1:off_w1 + state_dim, :hidden_dim].set(w1)
    slab = slab.at[off_b1, :hidden_dim].set(b1.reshape(-1))
    slab = slab.at[off_w2:off_w2 + hidden_dim, :hidden_dim].set(w2)
    slab = slab.at[off_b2, :hidden_dim].set(b2.reshape(-1))
    slab = slab.at[off_w3:off_w3 + hidden_dim, :action_num].set(w3)
    slab = slab.at[off_b3, :action_num].set(b3.reshape(-1))
    slab = slab.astype(dtype)

    offsets = dict(off_w1=off_w1, off_b1=off_b1, off_w2=off_w2,
                   off_b2=off_b2, off_w3=off_w3, off_b3=off_b3)
    dims = dict(S=state_dim, H=hidden_dim, A=action_num,
                H_pad=H_pad, A_pad=A_pad)
    return slab, offsets, dims


# --------------------------------------------------------------------------- #
# Tile-size / megacore heuristics
# --------------------------------------------------------------------------- #
def _num_tensorcores() -> int:
    """2 TensorCores per chip on v7x, 1 on v5e/v6e (safe fallback: 1)."""
    try:
        kind = jax.devices()[0].device_kind.lower()
        if "v7" in kind or "tpu7" in kind:
            return 2
    except Exception:
        pass
    return 1


def _pick_batch_tile(batch: int, granule: int, num_tc: int,
                     tb_max: int = 1024) -> int:
    """Largest batch tile that (a) keeps the grid-step count minimal,
    (b) gives every TensorCore at least one 'parallel' step on v7x, and
    (c) doesn't balloon B_pad for awkward batch sizes."""
    tb_max = max(granule, tb_max // granule * granule)
    n_steps = pl.cdiv(batch, tb_max)
    if num_tc > 1 and batch >= num_tc * granule:
        n_steps = max(n_steps, num_tc)
    return _round_up(pl.cdiv(batch, n_steps), granule)


# --------------------------------------------------------------------------- #
# Forward builder (packing hoisted, jitted hot path)
# --------------------------------------------------------------------------- #
def make_policy_net(params, *, param_dtype=jnp.float32):
    """Pack parameters once and return a jitted forward(x) -> (batch, A) probs.

    param_dtype=jnp.bfloat16 halves slab/x DMA and uses the fast MXU path on
    v6e/v7x; matmuls accumulate in f32 and softmax math stays f32."""
    slab, off, dims = pack_params(params, param_dtype)
    S, A = dims["S"], dims["A"]
    H_pad, A_pad = dims["H_pad"], dims["A_pad"]
    granule = 16 if jnp.dtype(param_dtype).itemsize == 2 else 8
    num_tc = _num_tensorcores()

    kernel = functools.partial(policy_net_kernel, S=S, H_pad=H_pad,
                               A_pad=A_pad, A=A, **off)

    @jax.jit
    def forward(x):
        batch = x.shape[0]
        tb = _pick_batch_tile(batch, granule, num_tc)
        b_pad = _round_up(batch, tb)

        xx = x.astype(param_dtype)
        if b_pad != batch:
            xx = jnp.pad(xx, ((0, b_pad - batch), (0, 0)))

        itemsize = jnp.dtype(param_dtype).itemsize
        flops = 2 * b_pad * (S * H_pad + H_pad * H_pad + H_pad * A_pad)
        bytes_accessed = itemsize * (b_pad * S + slab.size) + 4 * b_pad * A

        out = pl.pallas_call(
            kernel,
            out_shape=jax.ShapeDtypeStruct((b_pad, A), jnp.float32),
            grid=(b_pad // tb,),
            in_specs=[
                pl.BlockSpec((tb, S), lambda i: (i, 0)),       # batch-tiled x
                pl.BlockSpec(slab.shape, lambda i: (0, 0)),    # resident weights
            ],
            out_specs=pl.BlockSpec((tb, A), lambda i: (i, 0)),  # compact output
            compiler_params=pltpu.CompilerParams(
                dimension_semantics=("parallel",)),
            cost_estimate=pl.CostEstimate(
                flops=flops,
                transcendentals=b_pad * A_pad,
                bytes_accessed=bytes_accessed),
        )(xx, slab)

        return out[:batch] if b_pad != batch else out

    return forward


# --------------------------------------------------------------------------- #
# Params / reference
# --------------------------------------------------------------------------- #
def init_params(key, state_dim, hidden_dim, action_num):
    """Deterministic synthetic init (uniform, roughly PyTorch-style scale)."""
    ks = jax.random.split(key, 6)

    def lin(kw, kb, fan_in, fan_out):
        bound = 1.0 / jnp.sqrt(fan_in)
        w = jax.random.uniform(kw, (fan_in, fan_out), jnp.float32,
                               minval=-bound, maxval=bound)
        b = jax.random.uniform(kb, (1, fan_out), jnp.float32,
                               minval=-bound, maxval=bound)
        return w, b

    w1, b1 = lin(ks[0], ks[1], state_dim, hidden_dim)
    w2, b2 = lin(ks[2], ks[3], hidden_dim, hidden_dim)
    w3, b3 = lin(ks[4], ks[5], hidden_dim, action_num)
    return dict(w1=w1, b1=b1, w2=w2, b2=b2, w3=w3, b3=b3)


def policy_net_reference(x, p):
    h1 = jax.nn.relu(x @ p["w1"] + p["b1"])
    h2 = jax.nn.relu(h1 @ p["w2"] + p["b2"])
    return jax.nn.softmax(h2 @ p["w3"] + p["b3"], axis=1)


# --------------------------------------------------------------------------- #
# Main
# --------------------------------------------------------------------------- #
if __name__ == "__main__":
    batch, state_dim, hidden_dim, action_num = 8, 16, 32, 4

    key = jax.random.PRNGKey(0)
    k_x, k_p = jax.random.split(key)

    x = jax.random.normal(k_x, (batch, state_dim), dtype=jnp.float32)
    params = init_params(k_p, state_dim, hidden_dim, action_num)
    ref = policy_net_reference(x, params)

    # f32 path: matches the PyTorch-semantics reference tightly.
    forward_f32 = make_policy_net(params, param_dtype=jnp.float32)
    probs = jax.block_until_ready(forward_f32(x))
    assert probs.shape == (batch, action_num)
    assert bool(jnp.all(jnp.abs(jnp.sum(probs, axis=1) - 1.0) < 1e-5))
    assert bool(jnp.all(jnp.abs(probs - ref) < 1e-4))

    # bf16-operand path (v6e/v7x MXU / DMA perf lever); f32 accumulate+softmax.
    forward_bf16 = make_policy_net(params, param_dtype=jnp.bfloat16)
    probs_bf16 = jax.block_until_ready(forward_bf16(x))
    assert probs_bf16.shape == (batch, action_num)
    assert bool(jnp.all(jnp.abs(jnp.sum(probs_bf16, axis=1) - 1.0) < 1e-3))
    assert bool(jnp.all(jnp.abs(probs_bf16 - ref) < 3e-2))

    print("KERNEL_OK")
</pallas_src>

<mosaic_0001>
module attributes {stable_mosaic.version = 11 : i64} {
  func.func @policy_net_kernel(%arg0: i32, %arg1: memref<8x16xf32, #tpu.memory_space<vmem>>, %arg2: memref<320x128xf32, #tpu.memory_space<vmem>>, %arg3: memref<8x4xf32, #tpu.memory_space<vmem>>) attributes {dimension_semantics = [#tpu.dimension_semantics<parallel>], iteration_bounds = array<i64: 1>, scalar_prefetch = 0 : i64, scratch_operands = 0 : i64, tpu.core_type = #tpu.core_type<tc>, window_params = [{transform_indices = @transform_0, window_bounds = array<i64: 8, 16>}, {pipeline_mode = #tpu.pipeline_mode<synchronous>, transform_indices = @transform_1, window_bounds = array<i64: 320, 128>}, {transform_indices = @transform_2, window_bounds = array<i64: 8, 4>}]} {
    %c0 = arith.constant 0 : index
    %c0_0 = arith.constant 0 : index
    %0 = vector.load %arg1[%c0, %c0_0] : memref<8x16xf32, #tpu.memory_space<vmem>>, vector<8x16xf32>
    %c0_1 = arith.constant 0 : index
    %c0_2 = arith.constant 0 : index
    %1 = vector.load %arg2[%c0_1, %c0_2] : memref<320x128xf32, #tpu.memory_space<vmem>>, vector<16x128xf32>
    %c16 = arith.constant 16 : index
    %c0_3 = arith.constant 0 : index
    %2 = vector.load %arg2[%c16, %c0_3] : memref<320x128xf32, #tpu.memory_space<vmem>>, vector<1x128xf32>
    %c32 = arith.constant 32 : index
    %c0_4 = arith.constant 0 : index
    %3 = vector.load %arg2[%c32, %c0_4] : memref<320x128xf32, #tpu.memory_space<vmem>>, vector<128x128xf32>
    %c160 = arith.constant 160 : index
    %c0_5 = arith.constant 0 : index
    %4 = vector.load %arg2[%c160, %c0_5] : memref<320x128xf32, #tpu.memory_space<vmem>>, vector<1x128xf32>
    %c176 = arith.constant 176 : index
    %c0_6 = arith.constant 0 : index
    %5 = vector.load %arg2[%c176, %c0_6] : memref<320x128xf32, #tpu.memory_space<vmem>>, vector<128x128xf32>
    %c304 = arith.constant 304 : index
    %c0_7 = arith.constant 0 : index
    %6 = vector.load %arg2[%c304, %c0_7] : memref<320x128xf32, #tpu.memory_space<vmem>>, vector<1x128xf32>
    %cst = arith.constant dense<0.000000e+00> : vector<8x128xf32>
    %7 = tpu.matmul %0, %1, %cst {dimension_numbers = #tpu.dot_dimension_numbers<[1], [0], [0], [1], [0, 0, 1, 1], [], []>} : vector<8x16xf32>, vector<16x128xf32>, vector<8x128xf32> -> vector<8x128xf32>
    %8 = vector.broadcast %2 : vector<1x128xf32> to vector<8x128xf32>
    %9 = arith.addf %7, %8 : vector<8x128xf32>
    %cst_8 = arith.constant 0.000000e+00 : f32
    %10 = vector.broadcast %cst_8 : f32 to vector<8x128xf32>
    %11 = arith.maximumf %9, %10 : vector<8x128xf32>
    %cst_9 = arith.constant dense<0.000000e+00> : vector<8x128xf32>
    %12 = tpu.matmul %11, %3, %cst_9 {dimension_numbers = #tpu.dot_dimension_numbers<[1], [0], [0], [1], [0, 0, 1, 1], [], []>} : vector<8x128xf32>, vector<128x128xf32>, vector<8x128xf32> -> vector<8x128xf32>
    %13 = vector.broadcast %4 : vector<1x128xf32> to vector<8x128xf32>
    %14 = arith.addf %12, %13 : vector<8x128xf32>
    %cst_10 = arith.constant 0.000000e+00 : f32
    %15 = vector.broadcast %cst_10 : f32 to vector<8x128xf32>
    %16 = arith.maximumf %14, %15 : vector<8x128xf32>
    %cst_11 = arith.constant dense<0.000000e+00> : vector<8x128xf32>
    %17 = tpu.matmul %16, %5, %cst_11 {dimension_numbers = #tpu.dot_dimension_numbers<[1], [0], [0], [1], [0, 0, 1, 1], [], []>} : vector<8x128xf32>, vector<128x128xf32>, vector<8x128xf32> -> vector<8x128xf32>
    %18 = vector.broadcast %6 : vector<1x128xf32> to vector<8x128xf32>
    %19 = arith.addf %17, %18 : vector<8x128xf32>
    %20 = tpu.iota {dimensions = array<i32: 1>} : vector<1x128xi32>
    %c4_i32 = arith.constant 4 : i32
    %21 = vector.broadcast %c4_i32 : i32 to vector<1x128xi32>
    %22 = arith.cmpi slt, %20, %21 : vector<1x128xi32>
    %cst_12 = arith.constant -3.000000e+38 : f32
    %23 = vector.shape_cast %22 : vector<1x128xi1> to vector<1x128xi1>
    %24 = vector.broadcast %23 : vector<1x128xi1> to vector<8x128xi1>
    %25 = vector.broadcast %cst_12 : f32 to vector<8x128xf32>
    %26 = arith.select %24, %19, %25 : vector<8x128xi1>, vector<8x128xf32>
    %cst_13 = arith.constant dense<0xFF800000> : vector<8xf32>
    %27 = vector.multi_reduction <maximumf>, %26, %cst_13 [1] : vector<8x128xf32> to vector<8xf32>
    %28 = vector.shape_cast %27 : vector<8xf32> to vector<8x1xf32>
    %29 = vector.broadcast %28 : vector<8x1xf32> to vector<8x128xf32>
    %30 = arith.subf %26, %29 : vector<8x128xf32>
    %31 = math.exp %30 : vector<8x128xf32>
    %cst_14 = arith.constant dense<0.000000e+00> : vector<8xf32>
    %32 = vector.multi_reduction <add>, %31, %cst_14 [1] : vector<8x128xf32> to vector<8xf32>
    %33 = vector.shape_cast %32 : vector<8xf32> to vector<8x1xf32>
    %34 = vector.broadcast %33 : vector<8x1xf32> to vector<8x128xf32>
    %35 = arith.divf %31, %34 : vector<8x128xf32>
    %36 = vector.extract_strided_slice %35 {offsets = [0, 0], sizes = [8, 4], strides = [1, 1]} : vector<8x128xf32> to vector<8x4xf32>
    %c0_15 = arith.constant 0 : index
    %c0_16 = arith.constant 0 : index
    %37 = vector.load %arg3[%c0_15, %c0_16] : memref<8x4xf32, #tpu.memory_space<vmem>>, vector<8x4xf32>
    tpu.vector_store %arg3[%c0_15, %c0_16], %36 {strides = array<i32>} : memref<8x4xf32, #tpu.memory_space<vmem>>, vector<8x4xf32>,
    return
  }
  func.func @transform_0(%arg0: i32) -> (i32, i32) {
    %c0_i32 = arith.constant 0 : i32
    %c0_i32_0 = arith.constant 0 : i32
    return %arg0, %c0_i32 : i32, i32
  }
  func.func @transform_1(%arg0: i32) -> (i32, i32) {
    %c0_i32 = arith.constant 0 : i32
    %c0_i32_0 = arith.constant 0 : i32
    %c0_i32_1 = arith.constant 0 : i32
    return %c0_i32, %c0_i32_0 : i32, i32
  }
  func.func @transform_2(%arg0: i32) -> (i32, i32) {
    %c0_i32 = arith.constant 0 : i32
    %c0_i32_0 = arith.constant 0 : i32
    return %arg0, %c0_i32 : i32, i32
  }
}

</mosaic_0001>

<bundles_post_ra>
// kernel: forward.1
= control target key start
LH: loop header
LB: loop body
LE: loop exit
PB: predicated region body
PF: predicated region fallthrough
CT: control target
= control target key end

     0   :  { %7 = vsyncpa [#allocation3], 0  ;;  %s630_s0 = inlined_call_operand.hbm [shape: f32[8,16], index: 0, kind: input, shape index: {}]   ;;  %s631_s1 = inlined_call_operand.hbm [shape: f32[320,128], index: 1, kind: input, shape index: {}]   ;;  %s632_s2 = inlined_call_operand.vmem [shape: f32[8,4], index: 2, kind: output, shape index: {}]  }
   0x1   :  { %8 = vsyncpa [#allocation5], 0  ;;  %s554_s9 = smov [#allocation2]   ;;  %s555_s11 = smov [#allocation4]  }
   0x2   :  { %s15_s10 = sshll.u32 %s554_s9, 4  ;;  %s24_s12 = sshll.u32 %s555_s11, 4  ;;  %s16_s10 = int_to_ptr.vmem [resolvable:$true] %s15_s10  ;;  %s576_s12 = int_to_ptr.vmem [resolvable:$true] %s24_s12 }
   0x3   :  { %s506_s15 = scalar_lea.hbm %s630_s0, 128 }
   0x4   :  { %p507_p0 = scmp.ne.s32.totalorder %s630_s0, %s506_s15  ;;  %p510_p1 = scmp.lt.u32.totalorder %s506_s15, %s630_s0 }
   0x6   :  { %p512_p2 = pnand %p510_p1, %p507_p0 }
   0x8   :  { %515 = shalt.err (!%p512_p2)
}
   0x9   :  { %s516_s20 = scalar_lea.vmem %s16_s10, 128  ;;  %p521_p4 = scmp.lt.s32.totalorder %s16_s10, %s16_s10 }
   0xa   :  { %p517_p3 = scmp.ne.s32.totalorder %s16_s10, %s516_s20  ;;  %p522_p5 = scmp.lt.s32.totalorder %s516_s20, %s516_s20 }
   0xc   :  { %p523_p6 = por %p522_p5, %p521_p4 }
   0xe   :  { %p524_p7 = pnand %p523_p6, %p517_p3 }
  0x10   :  { %527 = shalt.err (!%p524_p7)
}
  0x11   :  { %18 = dma.hbm_to_vmem [thread:$0]  %s630_s0, 128, %s16_s10, [#allocation3]  }
  0x12   :  { %s528_s25 = scalar_lea.hbm %s631_s1, 5120 }
  0x13   :  { %p529_p8 = scmp.ne.s32.totalorder %s631_s1, %s528_s25  ;;  %p532_p9 = scmp.lt.u32.totalorder %s528_s25, %s631_s1 }
  0x15   :  { %p534_p10 = pnand %p532_p9, %p529_p8 }
  0x17   :  { %537 = shalt.err (!%p534_p10)
}
  0x18   :  { %s538_s30 = scalar_lea.vmem %s576_s12, 5120  ;;  %p543_p12 = scmp.lt.s32.totalorder %s576_s12, %s576_s12 }
  0x19   :  { %p539_p11 = scmp.ne.s32.totalorder %s576_s12, %s538_s30  ;;  %p544_p13 = scmp.lt.s32.totalorder %s538_s30, %s538_s30 }
  0x1b   :  { %p545_p0 = por %p544_p13, %p543_p12 }
  0x1d   :  { %p546_p1 = pnand %p545_p0, %p539_p11 }
  0x1f   :  { %549 = shalt.err (!%p546_p1)
}
  0x20   :  { %s556_s0 = smov 128   ;;  %s557_s3 = smov 8  }
  0x21   :  { %30 = dma.hbm_to_vmem [thread:$0]  %s631_s1, 5120, %s576_s12, [#allocation5], %s556_s0, %s556_s0, %s557_s3  }
  0x22   :  { %550 = dma.done.wait [#allocation3], 128  }
  0x23   :  { %551 = vsyncadd [#allocation3], 4294967168 }
  0x24   :  { %552 = dma.done.wait [#allocation5], 5120  }
  0x25   :  { %553 = vsyncadd [#allocation5], 4294962176  ;;  %v558_v0 = vmov 0.0|0.0   ;;  %vm559_vm0 = vmmov 0   ;;  %v560_v1 = vmov 0.0   ;;  %v38_v2 = vld [vmem:[#allocation4] sm:$0xff] }
  0x26   :  { %444 = vmatprep.subr.bf16.mxu0 %v558_v0  ;;  %371 = vmatprep.mubr.msk.f32.mxu0 %vm559_vm0, %v560_v1  ;;  %v39_v3 = vld [vmem:[#allocation4 + $0x8] sm:$0xff]  ;;  %v41_v5 = vld [vmem:[#allocation4 + $0x20] sm:$0xff]  ;;  %v43_v7 = vld [vmem:[#allocation4 + $0x30] sm:$0xff]  ;;  %vm79_vm1 = vcmask 130048   ;;  %vm318_vm3 = vcmask 31744  }
  0x27   :  { %447 = vmatprep.subr.bf16.mxu1 %v558_v0  ;;  %406 = vmatprep.mubr.msk.f32.mxu1 %vm559_vm0, %v560_v1  ;;  %v445_v4 = vpack.c.bf16 %v39_v3, %v38_v2  ;;  %v42_v6 = vld [vmem:[#allocation4 + $0x28] sm:$0xff]  ;;  %v44_v9 = vld [vmem:[#allocation4 + $0x38] sm:$0xff]  ;;  %v45_v12 = vld [vmem:[#allocation4 + $0x40] sm:$0xff] }
  0x28   :  { %v448_v8 = vpack.c.bf16 %v42_v6, %v41_v5  ;;  %v37_v10 = vld [vmem:[#allocation2] sm:$0xff]  ;;  %v451_v11 = vpack.c.bf16 %v44_v9, %v43_v7  ;;  %v46_v13 = vld [vmem:[#allocation4 + $0x48] sm:$0xff]  ;;  %v47_v15 = vld [vmem:[#allocation4 + $0x50] sm:$0xff] }
  0x29   :  { %446 = vmatpush3.bf16.msra.mxu0 %v445_v4  ;;  %v454_v14 = vpack.c.bf16 %v46_v13, %v45_v12  ;;  %v48_v16 = vld [vmem:[#allocation4 + $0x58] sm:$0xff]  ;;  %v49_v18 = vld [vmem:[#allocation4 + $0x60] sm:$0xff]  ;;  %v50_v19 = vld [vmem:[#allocation4 + $0x68] sm:$0xff] }
  0x2a   :  { %449 = vmatpush3.bf16.msra.mxu1 %v448_v8  ;;  %471 = vmatprep.subr.bf16.mxu0 %v558_v0  ;;  %v457_v17 = vpack.c.bf16 %v48_v16, %v47_v15  ;;  %v460_v20 = vpack.c.bf16 %v50_v19, %v49_v18  ;;  %v51_v21 = vld [vmem:[#allocation4 + $0x70] sm:$0xff]  ;;  %v52_v22 = vld [vmem:[#allocation4 + $0x78] sm:$0xff]  ;;  %v53_v24 = vld [vmem:[#allocation4 + $0x80] sm:$0xff] }
  0x2b   :  { %450 = vmatprep.subr.bf16.mxu1 %v558_v0  ;;  %v463_v23 = vpack.c.bf16 %v52_v22, %v51_v21  ;;  %v54_v25 = vld [vmem:[#allocation4 + $0x88] sm:$0xff]  ;;  %v55_v27 = vld [vmem:[#allocation4 + $0x90] sm:$0xff]  ;;  %v56_v28 = vld [vmem:[#allocation4 + $0x98] sm:$0xff] }
  0x2c   :  { %372 = vmatmul.mubr.msk.f32.vlgmr.msra.gmra.mrb[0].mxu0 %vm79_vm1, %v37_v10  ;;  %v466_v26 = vpack.c.bf16 %v54_v25, %v53_v24  ;;  %v469_v29 = vpack.c.bf16 %v56_v28, %v55_v27  ;;  %v58_v30 = vld [vmem:[#allocation4 + $0xb0] sm:$0xff]  ;;  %v59_v31 = vld [vmem:[#allocation4 + $0xb8] sm:$0xff]  ;;  %v60_v32 = vld [vmem:[#allocation4 + $0xc0] sm:$0xff] }
  0x2d   :  { %441 = vmatprep.mubr.msk.f32.mxu0 %vm559_vm0, %v560_v1  ;;  %v472_v33 = vpack.c.bf16 %v59_v31, %v58_v30  ;;  %v61_v34 = vld [vmem:[#allocation4 + $0xc8] sm:$0xff]  ;;  %v62_v36 = vld [vmem:[#allocation4 + $0xd0] sm:$0xff]  ;;  %v63_v37 = vld [vmem:[#allocation4 + $0xd8] sm:$0xff]  ;;  %v303_v1 = vlaneseq }
  0x2e   :  { %452 = vmatpush3.bf16.msra.mxu1 %v451_v11  ;;  %v475_v35 = vpack.c.bf16 %v61_v34, %v60_v32  ;;  %v478_v38 = vpack.c.bf16 %v63_v37, %v62_v36  ;;  %v64_v39 = vld [vmem:[#allocation4 + $0xe0] sm:$0xff]  ;;  %v65_v40 = vld [vmem:[#allocation4 + $0xe8] sm:$0xff]  ;;  %v66_v42 = vld [vmem:[#allocation4 + $0xf0] sm:$0xff] }
  0x2f   :  { %453 = vmatprep.subr.bf16.mxu1 %v558_v0  ;;  %473 = vmatpush3.bf16.msra.mxu0 %v472_v33  ;;  %v481_v41 = vpack.c.bf16 %v65_v40, %v64_v39  ;;  %v67_v43 = vld [vmem:[#allocation4 + $0xf8] sm:$0xff]  ;;  %v68_v45 = vld [vmem:[#allocation4 + $0x100] sm:$0xff]  ;;  %v69_v46 = vld [vmem:[#allocation4 + $0x108] sm:$0xff]  ;;  %v304_v2 = vand.u32 127, %v303_v1 }
  0x30   :  { %474 = vmatprep.subr.bf16.mxu0 %v558_v0  ;;  %v484_v44 = vpack.c.bf16 %v67_v43, %v66_v42  ;;  %v487_v47 = vpack.c.bf16 %v69_v46, %v68_v45  ;;  %v70_v48 = vld [vmem:[#allocation4 + $0x110] sm:$0xff]  ;;  %v71_v49 = vld [vmem:[#allocation4 + $0x118] sm:$0xff]  ;;  %v72_v56 = vld [vmem:[#allocation4 + $0x120] sm:$0xff] }
  0x31   :  { %v490_v50 = vpack.c.bf16 %v71_v49, %v70_v48  ;;  %v326_v51 = vld [vmem:[#allocation4 + $0x10] ss:$0 sm:$0xff]  ;;  %v73_v57 = vld [vmem:[#allocation4 + $0x128] sm:$0xff]  ;;  %v328_v59 = vld [vmem:[#allocation4 + $0xa0] ss:$0 sm:$0xff]  ;;  %vm305_vm2 = vcmp.lt.s32.totalorder %v304_v2, 4 }
  0x32   :  { %455 = vmatpush3.bf16.msra.mxu1 %v454_v14  ;;  %v493_v58 = vpack.c.bf16 %v73_v57, %v72_v56  ;;  %v329_v3 = vld [vmem:[#allocation4 + $0x130] ss:$0 sm:$0xff] }
  0x33   :  { %456 = vmatprep.subr.bf16.mxu1 %v558_v0  ;;  %476 = vmatpush3.bf16.msra.mxu0 %v475_v35 }
  0x34   :  { %477 = vmatprep.subr.bf16.mxu0 %v558_v0 }
  0x36   :  { %458 = vmatpush3.bf16.msra.mxu1 %v457_v17 }
  0x37   :  { %459 = vmatprep.subr.bf16.mxu1 %v558_v0  ;;  %479 = vmatpush3.bf16.msra.mxu0 %v478_v38 }
  0x38   :  { %480 = vmatprep.subr.bf16.mxu0 %v558_v0 }
  0x3a   :  { %461 = vmatpush3.bf16.msra.mxu1 %v460_v20 }
  0x3b   :  { %462 = vmatprep.subr.bf16.mxu1 %v558_v0  ;;  %482 = vmatpush3.bf16.msra.mxu0 %v481_v41 }
  0x3c   :  { %483 = vmatprep.subr.bf16.mxu0 %v558_v0 }
  0x3e   :  { %464 = vmatpush3.bf16.msra.mxu1 %v463_v23 }
  0x3f   :  { %465 = vmatprep.subr.bf16.mxu1 %v558_v0  ;;  %485 = vmatpush3.bf16.msra.mxu0 %v484_v44 }
  0x40   :  { %486 = vmatprep.subr.bf16.mxu0 %v558_v0 }
  0x42   :  { %467 = vmatpush3.bf16.msra.mxu1 %v466_v26 }
  0x43   :  { %468 = vmatprep.subr.bf16.mxu1 %v558_v0  ;;  %488 = vmatpush3.bf16.msra.mxu0 %v487_v47 }
  0x44   :  { %489 = vmatprep.subr.bf16.mxu0 %v558_v0 }
  0x46   :  { %470 = vmatpush3.bf16.msra.mxu1 %v469_v29 }
  0x47   :  { %491 = vmatpush3.bf16.msra.mxu0 %v490_v50 }
  0x48   :  { %492 = vmatprep.subr.bf16.mxu0 %v558_v0 }
  0x4b   :  { %494 = vmatpush3.bf16.msra.mxu0 %v493_v58 }
  0xff   :  { %v149_v52 = vpop.f32.mrb[0].mxu0 }
 0x100   :  { %v150_v53 = vadd.f32 %v326_v51, %v149_v52  ;;  %v373_v54 = vpop.f32.mrb[1].mxu0 }
 0x102   :  { %v153_v55 = vmax.f32 %v150_v53, 0.0 }
 0x104   :  { %407 = vmatmul.mubr.f32.vlgmr.msra.gmra.mrb[0].mxu1 %v153_v55 }
 0x1d7   :  { %v224_v60 = vpop.f32.mrb[0].mxu1 }
 0x1d8   :  { %v225_v61 = vadd.f32 %v328_v59, %v224_v60  ;;  %v408_v62 = vpop.f32.mrb[1].mxu1 }
 0x1da   :  { %v228_v63 = vmax.f32 %v225_v61, 0.0 }
 0x1dc   :  { %442 = vmatmul.mubr.f32.vlgmr.msra.gmra.mrb[2].mxu0 %v228_v63 }
 0x2af   :  { %v299_v0 = vpop.f32.mrb[2].mxu0 }
 0x2b0   :  { %v300_v4 = vadd.f32 %v329_v3, %v299_v0  ;;  %v443_v5 = vpop.f32.mrb[3].mxu0 }
 0x2b2   :  { %v308_v6 = vsel %vm305_vm2, %v300_v4, -3e+38 }
 0x2b3   :  { %309 = vmax.xlane.f32.xlu0 %v308_v6 }
 0x340   :  { %v310_v7 = vpop.xlane.xlu0 %309 }
 0x341   :  { %v311_v8 = vsub.f32 %v308_v6, %v310_v7 }
 0x343   :  { %v312_v9 = vmul.f32 1.442695, %v311_v8 }
 0x345   :  { %502 = vpow2.f32 %v312_v9 }
 0x34f   :  { %v503_v10 = vpop.eup %502 }
 0x350   :  { %314 = vadd.xlane.f32.xlu0 %v503_v10 }
 0x3dd   :  { %v315_v11 = vpop.xlane.xlu0 %314 }
 0x3de   :  { %504 = vrcp.f32 %v315_v11 }
 0x3e8   :  { %v505_v12 = vpop.eup %504 }
 0x3e9   :  { %v317_v13 = vmul.f32 %v505_v12, %v503_v10 }
 0x3eb   :  { %319 = vst.msk [vmem:[%s632_s2] sm:$0xff] %vm318_vm3, %v317_v13 }
 0x3ec   :  { %324 = vsyncpa [#allocation3], 1 }
 0x3ed   :  { %325 = vsyncpa [#allocation5], 1 }

</bundles_post_ra>
